<compile_context>
chip_gen: v7x
topology: tpu7x:2x2x1
jax: 0.10.0
libtpu: 0.0.40
codegen_flags: <defaults>
</compile_context>

<pallas_src>
import jax
import jax.numpy as jnp
from jax.experimental import pallas as pl
from jax.experimental.pallas import tpu as pltpu

IN_FEATURES = 13
OUT_FEATURES = 150
TM_MAX = 4096             # balanced batch tile cap (v6e/v7x sweet spot; fine on v5e)
PALLAS_MIN_BATCH = 512    # below this, plain XLA is faster (dispatch overhead)


def _round_up(x, m):
    return ((x + m - 1) // m) * m


def _cadrl_kernel(x_ref, w_ref, b_ref, o_ref):
    # Hot path: MXU matmul + VPU bias/ReLU on VMEM-resident blocks.
    x = x_ref[...]                                   # (tm, 13)
    w = w_ref[...]                                   # (13, 150), resident across steps
    b = b_ref[...]                                   # (1, 150),  resident across steps
    y = jnp.dot(x, w, preferred_element_type=jnp.float32) + b
    o_ref[...] = jnp.maximum(y, 0.0).astype(o_ref.dtype)


def prepare_params(weight, bias):
    """One-time param prep: transpose nn.Linear weight (150,13)->(13,150).
    No lane padding needed — block last dim 150 equals the full array dim."""
    w_t = weight.T.astype(jnp.float32)                       # (13, 150)
    b_row = bias.astype(jnp.float32).reshape(1, OUT_FEATURES)  # (1, 150)
    return w_t, b_row


def cadrl_forward(state, w_t, b_row, *, tm=None, out_dtype=jnp.float32):
    """Pallas path. state[0]: (batch, 13) f32. Returns (batch, 150) out_dtype."""
    x = state[0]
    batch = x.shape[0]

    if tm is None:
        if batch <= TM_MAX:
            # Single grid step; block == full array along batch (always legal).
            tm = batch
        else:
            # Balanced tiles: avoids near-empty trailing steps.
            n_steps = pl.cdiv(batch, TM_MAX)
            tm = _round_up(pl.cdiv(batch, n_steps), 8)

    grid = (pl.cdiv(batch, tm),)

    out_bytes = jnp.dtype(out_dtype).itemsize
    flops = 2 * batch * IN_FEATURES * OUT_FEATURES
    bytes_accessed = (
        4 * batch * IN_FEATURES              # activations in (f32)
        + out_bytes * batch * OUT_FEATURES   # activations out
        + 4 * IN_FEATURES * OUT_FEATURES     # weight
        + 4 * OUT_FEATURES                   # bias
    )

    return pl.pallas_call(
        _cadrl_kernel,
        out_shape=jax.ShapeDtypeStruct((batch, OUT_FEATURES), out_dtype),
        grid=grid,
        in_specs=[
            pl.BlockSpec((tm, IN_FEATURES), lambda i: (i, 0)),
            # Constant index_maps: weight/bias DMA'd once, resident across steps.
            pl.BlockSpec((IN_FEATURES, OUT_FEATURES), lambda i: (0, 0)),
            pl.BlockSpec((1, OUT_FEATURES), lambda i: (0, 0)),
        ],
        out_specs=pl.BlockSpec((tm, OUT_FEATURES), lambda i: (i, 0)),
        compiler_params=pltpu.CompilerParams(
            dimension_semantics=("parallel",),
            vmem_limit_bytes=32 * 1024 * 1024,  # explicit; safe on v5e/v6e/v7x
        ),
        cost_estimate=pl.CostEstimate(
            flops=flops, transcendentals=0, bytes_accessed=bytes_accessed),
    )(x, w_t, b_row)


def cadrl_forward_auto(state, w_t, b_row, *, out_dtype=jnp.float32):
    """Dispatch: tiny batches go to fused XLA (pallas launch overhead dominates),
    large batches go to the tiled Pallas kernel. No dead columns either way."""
    x = state[0]
    if x.shape[0] < PALLAS_MIN_BATCH:
        y = jnp.maximum(x @ w_t + b_row, 0.0)
        return y.astype(out_dtype)
    return cadrl_forward(state, w_t, b_row, out_dtype=out_dtype)


def init_params(key):
    """Deterministic init matching nn.Linear default: U(-1/sqrt(fan_in), +)."""
    k_w, k_b = jax.random.split(key)
    bound = 1.0 / jnp.sqrt(jnp.float32(IN_FEATURES))
    weight = jax.random.uniform(
        k_w, (OUT_FEATURES, IN_FEATURES), jnp.float32, -bound, bound)
    bias = jax.random.uniform(
        k_b, (OUT_FEATURES,), jnp.float32, -bound, bound)
    return weight, bias


if __name__ == "__main__":
    key = jax.random.PRNGKey(0)
    k_params, k_x1, k_x2 = jax.random.split(key, 3)
    weight, bias = init_params(k_params)
    w_t, b_row = prepare_params(weight, bias)

    # Case 1: demo-sized batch (batch=2), single grid step, block == full array.
    batch1 = 2
    x1 = jax.random.normal(k_x1, (batch1, IN_FEATURES), jnp.float32)
    out1 = jax.block_until_ready(cadrl_forward((x1,), w_t, b_row))
    ref1 = jnp.maximum(x1 @ weight.T + bias, 0.0)
    assert out1.shape == (batch1, OUT_FEATURES)
    assert jnp.allclose(out1, ref1, atol=1e-5, rtol=1e-5)

    # Case 2: non-divisible batch with forced tiny tile to exercise the
    # cdiv-grid masked-writeback path: batch=20, tm=8 -> grid=(3,), last block
    # is partial (4 valid rows).
    batch2 = 20
    x2 = jax.random.normal(k_x2, (batch2, IN_FEATURES), jnp.float32)
    out2 = jax.block_until_ready(cadrl_forward((x2,), w_t, b_row, tm=8))
    ref2 = jnp.maximum(x2 @ weight.T + bias, 0.0)
    assert out2.shape == (batch2, OUT_FEATURES)
    assert jnp.allclose(out2, ref2, atol=1e-5, rtol=1e-5)

    # Case 3: auto-dispatch fallback for tiny batches (pure XLA, no dead cols).
    out3 = jax.block_until_ready(cadrl_forward_auto((x1,), w_t, b_row))
    assert jnp.allclose(out3, ref1, atol=1e-5, rtol=1e-5)

    print("KERNEL_OK")
</pallas_src>

<mosaic_0001>
module attributes {stable_mosaic.version = 11 : i64} {
  func.func @_cadrl_kernel(%arg0: i32, %arg1: memref<2x13xf32, #tpu.memory_space<vmem>>, %arg2: memref<13x150xf32, #tpu.memory_space<vmem>>, %arg3: memref<1x150xf32, #tpu.memory_space<vmem>>, %arg4: memref<2x150xf32, #tpu.memory_space<vmem>>) attributes {dimension_semantics = [#tpu.dimension_semantics<parallel>], iteration_bounds = array<i64: 1>, scalar_prefetch = 0 : i64, scratch_operands = 0 : i64, tpu.core_type = #tpu.core_type<tc>, window_params = [{transform_indices = @transform_0, window_bounds = array<i64: 2, 13>}, {pipeline_mode = #tpu.pipeline_mode<synchronous>, transform_indices = @transform_1, window_bounds = array<i64: 13, 150>}, {pipeline_mode = #tpu.pipeline_mode<synchronous>, transform_indices = @transform_2, window_bounds = array<i64: 1, 150>}, {transform_indices = @transform_3, window_bounds = array<i64: 2, 150>}]} {
    %c0 = arith.constant 0 : index
    %c0_0 = arith.constant 0 : index
    %0 = vector.load %arg1[%c0, %c0_0] : memref<2x13xf32, #tpu.memory_space<vmem>>, vector<2x13xf32>
    %c0_1 = arith.constant 0 : index
    %c0_2 = arith.constant 0 : index
    %1 = vector.load %arg2[%c0_1, %c0_2] : memref<13x150xf32, #tpu.memory_space<vmem>>, vector<13x150xf32>
    %c0_3 = arith.constant 0 : index
    %c0_4 = arith.constant 0 : index
    %2 = vector.load %arg3[%c0_3, %c0_4] : memref<1x150xf32, #tpu.memory_space<vmem>>, vector<1x150xf32>
    %cst = arith.constant dense<0.000000e+00> : vector<2x150xf32>
    %3 = tpu.matmul %0, %1, %cst {dimension_numbers = #tpu.dot_dimension_numbers<[1], [0], [0], [1], [0, 0, 1, 1], [], []>} : vector<2x13xf32>, vector<13x150xf32>, vector<2x150xf32> -> vector<2x150xf32>
    %4 = vector.broadcast %2 : vector<1x150xf32> to vector<2x150xf32>
    %5 = arith.addf %3, %4 : vector<2x150xf32>
    %cst_5 = arith.constant 0.000000e+00 : f32
    %6 = vector.broadcast %cst_5 : f32 to vector<2x150xf32>
    %7 = arith.maximumf %5, %6 : vector<2x150xf32>
    %c0_6 = arith.constant 0 : index
    %c0_7 = arith.constant 0 : index
    %8 = vector.load %arg4[%c0_6, %c0_7] : memref<2x150xf32, #tpu.memory_space<vmem>>, vector<2x150xf32>
    tpu.vector_store %arg4[%c0_6, %c0_7], %7 {strides = array<i32>} : memref<2x150xf32, #tpu.memory_space<vmem>>, vector<2x150xf32>,
    return
  }
  func.func @transform_0(%arg0: i32) -> (i32, i32) {
    %c0_i32 = arith.constant 0 : i32
    %c0_i32_0 = arith.constant 0 : i32
    return %arg0, %c0_i32 : i32, i32
  }
  func.func @transform_1(%arg0: i32) -> (i32, i32) {
    %c0_i32 = arith.constant 0 : i32
    %c0_i32_0 = arith.constant 0 : i32
    %c0_i32_1 = arith.constant 0 : i32
    return %c0_i32, %c0_i32_0 : i32, i32
  }
  func.func @transform_2(%arg0: i32) -> (i32, i32) {
    %c0_i32 = arith.constant 0 : i32
    %c0_i32_0 = arith.constant 0 : i32
    %c0_i32_1 = arith.constant 0 : i32
    return %c0_i32, %c0_i32_0 : i32, i32
  }
  func.func @transform_3(%arg0: i32) -> (i32, i32) {
    %c0_i32 = arith.constant 0 : i32
    %c0_i32_0 = arith.constant 0 : i32
    return %arg0, %c0_i32 : i32, i32
  }
}

</mosaic_0001>

<bundles_post_ra>
// kernel: tpu_custom_call.1
= control target key start
LH: loop header
LB: loop body
LE: loop exit
PB: predicated region body
PF: predicated region fallthrough
CT: control target
= control target key end

     0   :  { %8 = vsyncpa [#allocation3], 0  ;;  %s336_s0 = inlined_call_operand.hbm [shape: f32[2,13], index: 0, kind: input, shape index: {}]   ;;  %s337_s1 = inlined_call_operand.hbm [shape: f32[13,150], index: 1, kind: input, shape index: {}]   ;;  %s338_s2 = inlined_call_operand.vmem [shape: f32[1,150], index: 2, kind: input, shape index: {}]   ;;  %s339_s3 = inlined_call_operand.hbm [shape: f32[2,150], index: 3, kind: output, shape index: {}]  }
   0x1   :  { %9 = vsyncpa [#allocation6], 0 }
   0x2   :  { %10 = vsyncpa [#allocation4], 0  ;;  %s262_s12 = smov [#allocation2]   ;;  %s263_s14 = smov [#allocation5]  }
   0x3   :  { %s17_s13 = sshll.u32 %s262_s12, 4  ;;  %s26_s15 = sshll.u32 %s263_s14, 4  ;;  %s18_s13 = int_to_ptr.vmem [resolvable:$true] %s17_s13  ;;  %s290_s15 = int_to_ptr.vmem [resolvable:$true] %s26_s15 }
   0x4   :  { %s190_s18 = scalar_lea.hbm %s336_s0, 32 }
   0x5   :  { %p191_p0 = scmp.ne.s32.totalorder %s336_s0, %s190_s18  ;;  %p194_p1 = scmp.lt.u32.totalorder %s190_s18, %s336_s0 }
   0x7   :  { %p196_p2 = pnand %p194_p1, %p191_p0 }
   0x9   :  { %199 = shalt.err (!%p196_p2)
}
   0xa   :  { %s200_s23 = scalar_lea.vmem %s18_s13, 32  ;;  %p205_p4 = scmp.lt.s32.totalorder %s18_s13, %s18_s13 }
   0xb   :  { %p201_p3 = scmp.ne.s32.totalorder %s18_s13, %s200_s23  ;;  %p206_p5 = scmp.lt.s32.totalorder %s200_s23, %s200_s23 }
   0xd   :  { %p207_p6 = por %p206_p5, %p205_p4 }
   0xf   :  { %p208_p7 = pnand %p207_p6, %p201_p3 }
  0x11   :  { %211 = shalt.err (!%p208_p7)
}
  0x12   :  { %20 = dma.hbm_to_vmem [thread:$0]  %s336_s0, 32, %s18_s13, [#allocation3]  }
  0x13   :  { %s212_s28 = scalar_lea.hbm %s337_s1, 512 }
  0x14   :  { %p213_p8 = scmp.ne.s32.totalorder %s337_s1, %s212_s28  ;;  %p216_p9 = scmp.lt.u32.totalorder %s212_s28, %s337_s1 }
  0x16   :  { %p218_p10 = pnand %p216_p9, %p213_p8 }
  0x18   :  { %221 = shalt.err (!%p218_p10)
}
  0x19   :  { %s222_s6 = scalar_lea.vmem %s290_s15, 512  ;;  %p227_p12 = scmp.lt.s32.totalorder %s290_s15, %s290_s15 }
  0x1a   :  { %p223_p11 = scmp.ne.s32.totalorder %s290_s15, %s222_s6  ;;  %p228_p13 = scmp.lt.s32.totalorder %s222_s6, %s222_s6 }
  0x1c   :  { %p229_p0 = por %p228_p13, %p227_p12 }
  0x1e   :  { %p230_p1 = pnand %p229_p0, %p223_p11 }
  0x20   :  { %233 = shalt.err (!%p230_p1)
}
  0x21   :  { %s264_s0 = smov 256   ;;  %s265_s7 = smov 16  }
  0x22   :  { %32 = dma.hbm_to_vmem [thread:$0]  %s337_s1, 512, %s290_s15, [#allocation6], %s264_s0, %s264_s0, %s265_s7  }
  0x23   :  { %256 = dma.done.wait [#allocation3], 32  }
  0x24   :  { %257 = vsyncadd [#allocation3], 4294967264 }
  0x25   :  { %258 = dma.done.wait [#allocation6], 512  }
  0x26   :  { %259 = vsyncadd [#allocation6], 4294966784  ;;  %v266_v0 = vmov 0.0   ;;  %vm62_vm0 = vcmask 1044480   ;;  %vm267_vm1 = vmmov 1   ;;  %v43_v1 = vld [vmem:[#allocation5 + $0x8] sm:$0xff]  ;;  %v48_v8 = vlaneseq }
  0x27   :  { %133 = vmatprep.mubr.f32.mxu0 %v266_v0  ;;  %vm177_vm2 = vmpackc.low %vm62_vm0, %vm267_vm1  ;;  %v45_v2 = vld [vmem:[#allocation5 + $0x18] sm:$0x1f]  ;;  %v42_v3 = vld [vmem:[#allocation5] sm:$0xff]  ;;  %vm58_vm3 = vcmask 105472   ;;  %v268_v13 = vmov 1983009808  }
  0x28   :  { %v176_v4 = vpack.c.bf16 %v45_v2, %v43_v1  ;;  %v44_v5 = vld [vmem:[#allocation5 + $0x10] sm:$0x1f]  ;;  %v41_v7 = vld [vmem:[#allocation2] sm:$0x3]  ;;  %v49_v9 = vshrl.u32 %v48_v8, 7  ;;  %v146_v14 = vunpack.c.l.s4 %v268_v13  ;;  %vm153_vm4 = vcmask 1041408  }
  0x29   :  { %v179_v6 = vpack.c.bf16 %v44_v5, %v42_v3  ;;  %v46_v11 = vld [vmem:[%s338_s2] sm:$0x3]  ;;  %vm154_vm5 = vcmask 175106   ;;  %s269_s11 = smov [#allocation7]  }
  0x2a   :  { %178 = vmatprep.subr.msk.bf16.mxu0 %vm177_vm2, %v176_v4  ;;  %v50_v10 = vsub.s32 0, %v49_v9  ;;  %v54_v12 = vsub.s32 1, %v49_v9  ;;  %v147_v18 = vunpack.c.0.s8 %v146_v14  ;;  %s163_s12 = sshll.u32 %s269_s11, 4  ;;  %vm155_vm6 = vmor %vm154_vm5, %vm153_vm4  ;;  %s164_s12 = int_to_ptr.vmem [resolvable:$true] %s163_s12 }
  0x2b   :  { %181 = vmatpush1.bf16.msk.msra.mxu0 %vm177_vm2, %v179_v6  ;;  %s234_s2 = scalar_lea.vmem %s164_s12, 64  ;;  %p239_p3 = scmp.lt.s32.totalorder %s164_s12, %s164_s12 }
  0x2c   :  { %v51_v15 = vrot.slane %v46_v11, %v50_v10  ;;  %v55_v16 = vrot.slane %v46_v11, %v54_v12  ;;  %v150_v24 = vsub.s32 %v147_v18, %v49_v9  ;;  %p235_p2 = scmp.ne.s32.totalorder %s164_s12, %s234_s2  ;;  %p240_p4 = scmp.lt.s32.totalorder %s234_s2, %s234_s2 }
  0x2e   :  { %175 = vmatmul.mubr.msk.f32.vlgmr.msra.gmra.mrb[0].mxu0 %vm58_vm3, %v41_v7  ;;  %p241_p5 = por %p240_p4, %p239_p3 }
  0x30   :  { %p242_p6 = pnand %p241_p5, %p235_p2 }
 0x101   :  { %v135_v17 = vpop.f32.mrb[0].mxu0 }
 0x102   :  { %v136_v19 = vadd.f32 %v135_v17, %v51_v15  ;;  %v137_v20 = vpop.f32.mrb[1].mxu0 }
 0x103   :  { %v138_v21 = vadd.f32 %v137_v20, %v55_v16 }
 0x104   :  { %v140_v22 = vmax.f32 %v136_v19, 0.0 }
 0x105   :  { %v141_v23 = vmax.f32 %v138_v21, 0.0 }
 0x107   :  { %v144_v25 = vcombine.low %v140_v22, %v141_v23 }
 0x109   :  { %v151_v26 = vrot.slane %v144_v25, %v150_v24 }
 0x10b   :  { %156 = vst.msk [vmem:[#allocation7] sm:$0xf] %vm155_vm6, %v151_v26 }
 0x10c   :  { %245 = shalt.err (!%p242_p6)
}
 0x10d   :  { %s246_s15 = scalar_lea.hbm %s339_s3, 64 }
 0x10e   :  { %p247_p7 = scmp.ne.s32.totalorder %s339_s3, %s246_s15  ;;  %p250_p8 = scmp.lt.u32.totalorder %s246_s15, %s339_s3 }
 0x110   :  { %p252_p9 = pnand %p250_p8, %p247_p7 }
 0x112   :  { %255 = shalt.err (!%p252_p9)
}
 0x113   :  { %166 = dma.vmem_to_hbm [thread:$0]  %s164_s12, 64, %s339_s3, [#allocation4]  }
 0x114   :  { %260 = dma.done.wait [#allocation4], 64  }
 0x115   :  { %261 = vsyncadd [#allocation4], 4294967232 }
 0x116   :  { %170 = vsyncpa [#allocation3], 1 }
 0x117   :  { %171 = vsyncpa [#allocation6], 1 }
 0x118   :  { %172 = vsyncpa [#allocation4], 1 }

</bundles_post_ra>
